<compile_context>
chip_gen: v7x
topology: tpu7x:2x2x1
jax: 0.10.0
libtpu: 0.0.40
codegen_flags: <defaults>
</compile_context>

<pallas_src>
import jax
import jax.numpy as jnp
from jax.experimental import pallas as pl
from jax.experimental.pallas import tpu as pltpu

EPS = 1e-10
BIG = 1e30  # squared-norm sentinel for padded points -> t ~ 0, p ~ 0


def _round_up(x, m):
    return ((x + m - 1) // m) * m


def _tsne_tile_kernel(ti_ref, tj_ref, dc_ref,          # scalar-prefetch (SMEM)
                      p_ref, y_ref, yt_ref, sqr_ref, sqc_ref,  # inputs
                      s_ref, b_ref):                   # outputs (accumulators)
    k = pl.program_id(0)

    @pl.when(k == 0)
    def _init():
        s_ref[...] = jnp.zeros_like(s_ref)
        b_ref[...] = jnp.zeros_like(b_ref)

    # 1 + ||y_i - y_j||^2 for this (row-tile, col-tile) pair.
    gram = jnp.dot(y_ref[...], yt_ref[...],
                   preferred_element_type=jnp.float32)          # (tm, tn) MXU
    one_plus_d2 = (1.0 + sqr_ref[...]) + sqc_ref[...] - 2.0 * gram

    t = 1.0 / one_plus_d2                                       # Student-t (nu=1)
    log_d = jnp.log(one_plus_d2)

    # Diagonal tiles: strict upper triangle via symmetry,
    #   sum_{i<j} t = (sum_all(t) - n_real_diag) / 2   (t_ii == 1, symmetric).
    # Off-diagonal (j > i) tiles: dc == 0 and scale == 1, everything counts.
    is_diag = (ti_ref[k] == tj_ref[k]).astype(jnp.float32)
    n_diag = dc_ref[k].astype(jnp.float32)
    scale = 1.0 - 0.5 * is_diag

    s_tile = (jnp.sum(t, keepdims=True) - n_diag) * scale       # (1, 1)
    # p is zero on/below the diagonal and on padding -> no mask needed.
    b_tile = jnp.sum(p_ref[...] * log_d, keepdims=True)         # (1, 1)

    s_ref[...] += s_tile
    b_ref[...] += b_tile


def tsne_forward(p_condensed, embedding_weight, *, tile=256):
    """Pallas implementation of tSNE.forward.

    p_condensed:      (M,) with M = N*(N-1)/2, torch.pdist ordering.
    embedding_weight: (N, latent_dim).
    Returns a scalar (float32).
    """
    y = embedding_weight.astype(jnp.float32)
    n, d = y.shape
    p = p_condensed.astype(jnp.float32)

    # ---- Y-independent terms on the condensed vector (O(M)) --------------
    c_term = jnp.sum(p * jnp.log(jnp.maximum(p, EPS)))   # sum p*log p
    p_sum = jnp.sum(p)                                   # sum p

    # ---- tile / padding choice (keep tiles multiples of (8,128)) ---------
    assert tile % 128 == 0, "tile must be a multiple of 128"
    t_eff = min(tile, _round_up(n, 128))
    npad = _round_up(n, t_eff)
    nt = npad // t_eff

    # ---- dense upper-triangle-only p (gather, no scatter) ----------------
    rows = jnp.arange(npad, dtype=jnp.int32)[:, None]
    cols = jnp.arange(npad, dtype=jnp.int32)[None, :]
    in_tri = (cols > rows) & (rows < n) & (cols < n)
    cond_idx = rows * n - (rows * (rows + 1)) // 2 + (cols - rows - 1)
    p_upper = jnp.where(in_tri, p[jnp.where(in_tri, cond_idx, 0)], 0.0)

    # ---- Y in both layouts + squared norms (padding pushed to "infinity") -
    y_pad = jnp.pad(y, ((0, npad - n), (0, 0)))          # (npad, d), rows
    y_t = y_pad.T                                        # (d, npad), lane-dense cols
    sq = jnp.sum(y * y, axis=1)
    sq_pad = jnp.pad(sq, (0, npad - n), constant_values=BIG)
    sq_row = sq_pad[:, None]                             # (npad, 1)
    sq_col = sq_pad[None, :]                             # (1, npad)

    # ---- static schedule of upper-triangle tiles (scalar prefetch) -------
    ti_l, tj_l, dc_l = [], [], []
    for i in range(nt):
        for j in range(i, nt):
            ti_l.append(i)
            tj_l.append(j)
            dc_l.append(max(0, min(t_eff, n - i * t_eff)) if i == j else 0)
    num_tiles = len(ti_l)
    ti = jnp.asarray(ti_l, jnp.int32)
    tj = jnp.asarray(tj_l, jnp.int32)
    dc = jnp.asarray(dc_l, jnp.int32)

    s_out, b_out = pl.pallas_call(
        _tsne_tile_kernel,
        out_shape=(jax.ShapeDtypeStruct((1, 1), jnp.float32),
                   jax.ShapeDtypeStruct((1, 1), jnp.float32)),
        grid_spec=pltpu.PrefetchScalarGridSpec(
            num_scalar_prefetch=3,
            grid=(num_tiles,),
            in_specs=[
                pl.BlockSpec((t_eff, t_eff), lambda k, ti, tj, dc: (ti[k], tj[k])),
                pl.BlockSpec((t_eff, d),     lambda k, ti, tj, dc: (ti[k], 0)),
                pl.BlockSpec((d, t_eff),     lambda k, ti, tj, dc: (0, tj[k])),
                pl.BlockSpec((t_eff, 1),     lambda k, ti, tj, dc: (ti[k], 0)),
                pl.BlockSpec((1, t_eff),     lambda k, ti, tj, dc: (0, tj[k])),
            ],
            out_specs=(pl.BlockSpec((1, 1), lambda k, ti, tj, dc: (0, 0)),
                       pl.BlockSpec((1, 1), lambda k, ti, tj, dc: (0, 0))),
        ),
        compiler_params=pltpu.CompilerParams(
            dimension_semantics=("arbitrary",)),
    )(ti, tj, dc, p_upper, y_pad, y_t, sq_row, sq_col)

    s_sum = s_out[0, 0]
    b_sum = b_out[0, 0]
    # loss = sum p*log p  +  sum_{i<j} p*log(1+d2)  +  log(S) * sum p
    return c_term + b_sum + jnp.log(s_sum) * p_sum


def _tsne_ref(p_condensed, embedding_weight):
    """Plain-JAX reference matching the PyTorch module semantics."""
    y = embedding_weight.astype(jnp.float32)
    n = y.shape[0]
    iu = jnp.triu_indices(n, k=1)
    diff = y[iu[0]] - y[iu[1]]
    dist = jnp.sum(diff * diff, axis=-1)          # pdist(...)^2
    dist = (1.0 + dist) ** (-1.0)
    q = jnp.maximum(dist / jnp.sum(dist), EPS)
    p = p_condensed.astype(jnp.float32)
    return jnp.sum(p * (jnp.log(jnp.maximum(p, EPS)) - jnp.log(q)))


if __name__ == "__main__":
    size = 256          # number of embedded points
    latent_dim = 2
    m = size * (size - 1) // 2   # condensed pdist length

    key = jax.random.PRNGKey(0)
    k_w, k_p = jax.random.split(key)

    # Deterministic "nn.Embedding" init: N(0, 1), matching PyTorch defaults.
    embedding_weight = jax.random.normal(k_w, (size, latent_dim),
                                         dtype=jnp.float32)

    # Input p: a condensed probability vector (positive, sums to 1).
    p_raw = jax.random.uniform(k_p, (m,), dtype=jnp.float32) + 1e-3
    p = p_raw / jnp.sum(p_raw)

    # tile=128 -> 2x2 tile grid, 3 upper-triangle tiles (exercises diag +
    # off-diag paths and the cross-tile accumulation).
    loss = tsne_forward(p, embedding_weight, tile=128)
    loss = jax.block_until_ready(loss)

    ref = _tsne_ref(p, embedding_weight)
    assert jnp.allclose(loss, ref, rtol=1e-5, atol=1e-4), (loss, ref)

    print("KERNEL_OK")
</pallas_src>

<mosaic_0001>
module attributes {stable_mosaic.version = 11 : i64} {
  func.func @_tsne_tile_kernel(%arg0: i32, %arg1: memref<3xi32, #tpu.memory_space<smem>>, %arg2: memref<3xi32, #tpu.memory_space<smem>>, %arg3: memref<3xi32, #tpu.memory_space<smem>>, %arg4: memref<128x128xf32, #tpu.memory_space<vmem>>, %arg5: memref<128x2xf32, #tpu.memory_space<vmem>>, %arg6: memref<2x128xf32, #tpu.memory_space<vmem>>, %arg7: memref<128x1xf32, #tpu.memory_space<vmem>>, %arg8: memref<1x128xf32, #tpu.memory_space<vmem>>, %arg9: memref<1x1xf32, #tpu.memory_space<vmem>>, %arg10: memref<1x1xf32, #tpu.memory_space<vmem>>) attributes {dimension_semantics = [#tpu.dimension_semantics<arbitrary>], iteration_bounds = array<i64: 3>, scalar_prefetch = 3 : i64, scratch_operands = 0 : i64, tpu.core_type = #tpu.core_type<tc>, window_params = [{transform_indices = @transform_0, window_bounds = array<i64: 128, 128>}, {transform_indices = @transform_1, window_bounds = array<i64: 128, 2>}, {transform_indices = @transform_2, window_bounds = array<i64: 2, 128>}, {transform_indices = @transform_3, window_bounds = array<i64: 128, 1>}, {transform_indices = @transform_4, window_bounds = array<i64: 1, 128>}, {pipeline_mode = #tpu.pipeline_mode<synchronous>, transform_indices = @transform_5, window_bounds = array<i64: 1, 1>}, {pipeline_mode = #tpu.pipeline_mode<synchronous>, transform_indices = @transform_6, window_bounds = array<i64: 1, 1>}]} {
    %c0_i32 = arith.constant 0 : i32
    %0 = arith.cmpi eq, %arg0, %c0_i32 : i32
    %1 = arith.extui %0 : i1 to i32
    %c0_i32_0 = arith.constant 0 : i32
    %2 = arith.cmpi ne, %1, %c0_i32_0 : i32
    scf.if %2 {
      %cst_25 = arith.constant 0.000000e+00 : f32
      %53 = vector.broadcast %cst_25 : f32 to vector<1x1xf32>
      %c0_26 = arith.constant 0 : index
      %c0_27 = arith.constant 0 : index
      %54 = vector.load %arg9[%c0_26, %c0_27] : memref<1x1xf32, #tpu.memory_space<vmem>>, vector<1x1xf32>
      tpu.vector_store %arg9[%c0_26, %c0_27], %53 {strides = array<i32>} : memref<1x1xf32, #tpu.memory_space<vmem>>, vector<1x1xf32>,
      %cst_28 = arith.constant 0.000000e+00 : f32
      %55 = vector.broadcast %cst_28 : f32 to vector<1x1xf32>
      %c0_29 = arith.constant 0 : index
      %c0_30 = arith.constant 0 : index
      %56 = vector.load %arg10[%c0_29, %c0_30] : memref<1x1xf32, #tpu.memory_space<vmem>>, vector<1x1xf32>
      tpu.vector_store %arg10[%c0_29, %c0_30], %55 {strides = array<i32>} : memref<1x1xf32, #tpu.memory_space<vmem>>, vector<1x1xf32>,
    } else {
    }
    %c0 = arith.constant 0 : index
    %c0_1 = arith.constant 0 : index
    %3 = vector.load %arg5[%c0, %c0_1] : memref<128x2xf32, #tpu.memory_space<vmem>>, vector<128x2xf32>
    %c0_2 = arith.constant 0 : index
    %c0_3 = arith.constant 0 : index
    %4 = vector.load %arg6[%c0_2, %c0_3] : memref<2x128xf32, #tpu.memory_space<vmem>>, vector<2x128xf32>
    %cst = arith.constant dense<0.000000e+00> : vector<128x128xf32>
    %5 = tpu.matmul %3, %4, %cst {dimension_numbers = #tpu.dot_dimension_numbers<[1], [0], [0], [1], [0, 0, 1, 1], [], []>} : vector<128x2xf32>, vector<2x128xf32>, vector<128x128xf32> -> vector<128x128xf32>
    %c0_4 = arith.constant 0 : index
    %c0_5 = arith.constant 0 : index
    %6 = vector.load %arg7[%c0_4, %c0_5] : memref<128x1xf32, #tpu.memory_space<vmem>>, vector<128x1xf32>
    %cst_6 = arith.constant 1.000000e+00 : f32
    %7 = vector.broadcast %cst_6 : f32 to vector<128x1xf32>
    %8 = arith.addf %7, %6 : vector<128x1xf32>
    %c0_7 = arith.constant 0 : index
    %c0_8 = arith.constant 0 : index
    %9 = vector.load %arg8[%c0_7, %c0_8] : memref<1x128xf32, #tpu.memory_space<vmem>>, vector<1x128xf32>
    %10 = vector.broadcast %8 : vector<128x1xf32> to vector<128x128xf32>
    %11 = vector.broadcast %9 : vector<1x128xf32> to vector<128x128xf32>
    %12 = arith.addf %10, %11 : vector<128x128xf32>
    %cst_9 = arith.constant 2.000000e+00 : f32
    %13 = vector.broadcast %cst_9 : f32 to vector<128x128xf32>
    %14 = arith.mulf %13, %5 : vector<128x128xf32>
    %15 = arith.subf %12, %14 : vector<128x128xf32>
    %cst_10 = arith.constant 1.000000e+00 : f32
    %16 = vector.broadcast %cst_10 : f32 to vector<128x128xf32>
    %17 = arith.divf %16, %15 : vector<128x128xf32>
    %18 = math.log %15 : vector<128x128xf32>
    %19 = arith.index_cast %arg0 : i32 to index
    %20 = memref.load %arg1[%19] : memref<3xi32, #tpu.memory_space<smem>>
    %21 = arith.index_cast %arg0 : i32 to index
    %22 = memref.load %arg2[%21] : memref<3xi32, #tpu.memory_space<smem>>
    %23 = arith.cmpi eq, %20, %22 : i32
    %24 = arith.extui %23 : i1 to i32
    %25 = arith.sitofp %24 : i32 to f32
    %26 = arith.index_cast %arg0 : i32 to index
    %27 = memref.load %arg3[%26] : memref<3xi32, #tpu.memory_space<smem>>
    %28 = arith.sitofp %27 : i32 to f32
    %cst_11 = arith.constant 5.000000e-01 : f32
    %29 = arith.mulf %cst_11, %25 : f32
    %cst_12 = arith.constant 1.000000e+00 : f32
    %30 = arith.subf %cst_12, %29 : f32
    %31 = vector.shape_cast %17 : vector<128x128xf32> to vector<1x128x128xf32>
    %cst_13 = arith.constant dense<0.000000e+00> : vector<1xf32>
    %32 = vector.multi_reduction <add>, %31, %cst_13 [1, 2] : vector<1x128x128xf32> to vector<1xf32>
    %33 = vector.shape_cast %32 : vector<1xf32> to vector<1x1x1xf32>
    %34 = vector.extract %33[0, 0, 0] : f32 from vector<1x1x1xf32>
    %35 = vector.broadcast %34 : f32 to vector<1x1xf32>
    %36 = vector.broadcast %28 : f32 to vector<1x1xf32>
    %37 = arith.subf %35, %36 : vector<1x1xf32>
    %38 = vector.broadcast %30 : f32 to vector<1x1xf32>
    %39 = arith.mulf %37, %38 : vector<1x1xf32>
    %c0_14 = arith.constant 0 : index
    %c0_15 = arith.constant 0 : index
    %40 = vector.load %arg4[%c0_14, %c0_15] : memref<128x128xf32, #tpu.memory_space<vmem>>, vector<128x128xf32>
    %41 = arith.mulf %40, %18 : vector<128x128xf32>
    %42 = vector.shape_cast %41 : vector<128x128xf32> to vector<1x128x128xf32>
    %cst_16 = arith.constant dense<0.000000e+00> : vector<1xf32>
    %43 = vector.multi_reduction <add>, %42, %cst_16 [1, 2] : vector<1x128x128xf32> to vector<1xf32>
    %44 = vector.shape_cast %43 : vector<1xf32> to vector<1x1x1xf32>
    %45 = vector.extract %44[0, 0, 0] : f32 from vector<1x1x1xf32>
    %46 = vector.broadcast %45 : f32 to vector<1x1xf32>
    %c0_17 = arith.constant 0 : index
    %c0_18 = arith.constant 0 : index
    %47 = vector.load %arg9[%c0_17, %c0_18] : memref<1x1xf32, #tpu.memory_space<vmem>>, vector<1x1xf32>
    %48 = arith.addf %47, %39 : vector<1x1xf32>
    %c0_19 = arith.constant 0 : index
    %c0_20 = arith.constant 0 : index
    %49 = vector.load %arg9[%c0_19, %c0_20] : memref<1x1xf32, #tpu.memory_space<vmem>>, vector<1x1xf32>
    tpu.vector_store %arg9[%c0_19, %c0_20], %48 {strides = array<i32>} : memref<1x1xf32, #tpu.memory_space<vmem>>, vector<1x1xf32>,
    %c0_21 = arith.constant 0 : index
    %c0_22 = arith.constant 0 : index
    %50 = vector.load %arg10[%c0_21, %c0_22] : memref<1x1xf32, #tpu.memory_space<vmem>>, vector<1x1xf32>
    %51 = arith.addf %50, %46 : vector<1x1xf32>
    %c0_23 = arith.constant 0 : index
    %c0_24 = arith.constant 0 : index
    %52 = vector.load %arg10[%c0_23, %c0_24] : memref<1x1xf32, #tpu.memory_space<vmem>>, vector<1x1xf32>
    tpu.vector_store %arg10[%c0_23, %c0_24], %51 {strides = array<i32>} : memref<1x1xf32, #tpu.memory_space<vmem>>, vector<1x1xf32>,
    return
  }
  func.func @transform_0(%arg0: i32, %arg1: memref<3xi32, #tpu.memory_space<smem>>, %arg2: memref<3xi32, #tpu.memory_space<smem>>, %arg3: memref<3xi32, #tpu.memory_space<smem>>) -> (i32, i32) {
    %0 = arith.index_cast %arg0 : i32 to index
    %1 = memref.load %arg1[%0] : memref<3xi32, #tpu.memory_space<smem>>
    %2 = arith.index_cast %arg0 : i32 to index
    %3 = memref.load %arg2[%2] : memref<3xi32, #tpu.memory_space<smem>>
    %c0_i32 = arith.constant 0 : i32
    return %1, %3 : i32, i32
  }
  func.func @transform_1(%arg0: i32, %arg1: memref<3xi32, #tpu.memory_space<smem>>, %arg2: memref<3xi32, #tpu.memory_space<smem>>, %arg3: memref<3xi32, #tpu.memory_space<smem>>) -> (i32, i32) {
    %0 = arith.index_cast %arg0 : i32 to index
    %1 = memref.load %arg1[%0] : memref<3xi32, #tpu.memory_space<smem>>
    %c0_i32 = arith.constant 0 : i32
    %c0_i32_0 = arith.constant 0 : i32
    return %1, %c0_i32 : i32, i32
  }
  func.func @transform_2(%arg0: i32, %arg1: memref<3xi32, #tpu.memory_space<smem>>, %arg2: memref<3xi32, #tpu.memory_space<smem>>, %arg3: memref<3xi32, #tpu.memory_space<smem>>) -> (i32, i32) {
    %0 = arith.index_cast %arg0 : i32 to index
    %1 = memref.load %arg2[%0] : memref<3xi32, #tpu.memory_space<smem>>
    %c0_i32 = arith.constant 0 : i32
    %c0_i32_0 = arith.constant 0 : i32
    return %c0_i32, %1 : i32, i32
  }
  func.func @transform_3(%arg0: i32, %arg1: memref<3xi32, #tpu.memory_space<smem>>, %arg2: memref<3xi32, #tpu.memory_space<smem>>, %arg3: memref<3xi32, #tpu.memory_space<smem>>) -> (i32, i32) {
    %0 = arith.index_cast %arg0 : i32 to index
    %1 = memref.load %arg1[%0] : memref<3xi32, #tpu.memory_space<smem>>
    %c0_i32 = arith.constant 0 : i32
    %c0_i32_0 = arith.constant 0 : i32
    return %1, %c0_i32 : i32, i32
  }
  func.func @transform_4(%arg0: i32, %arg1: memref<3xi32, #tpu.memory_space<smem>>, %arg2: memref<3xi32, #tpu.memory_space<smem>>, %arg3: memref<3xi32, #tpu.memory_space<smem>>) -> (i32, i32) {
    %0 = arith.index_cast %arg0 : i32 to index
    %1 = memref.load %arg2[%0] : memref<3xi32, #tpu.memory_space<smem>>
    %c0_i32 = arith.constant 0 : i32
    %c0_i32_0 = arith.constant 0 : i32
    return %c0_i32, %1 : i32, i32
  }
  func.func @transform_5(%arg0: i32, %arg1: memref<3xi32, #tpu.memory_space<smem>>, %arg2: memref<3xi32, #tpu.memory_space<smem>>, %arg3: memref<3xi32, #tpu.memory_space<smem>>) -> (i32, i32) {
    %c0_i32 = arith.constant 0 : i32
    %c0_i32_0 = arith.constant 0 : i32
    %c0_i32_1 = arith.constant 0 : i32
    return %c0_i32, %c0_i32_0 : i32, i32
  }
  func.func @transform_6(%arg0: i32, %arg1: memref<3xi32, #tpu.memory_space<smem>>, %arg2: memref<3xi32, #tpu.memory_space<smem>>, %arg3: memref<3xi32, #tpu.memory_space<smem>>) -> (i32, i32) {
    %c0_i32 = arith.constant 0 : i32
    %c0_i32_0 = arith.constant 0 : i32
    %c0_i32_1 = arith.constant 0 : i32
    return %c0_i32, %c0_i32_0 : i32, i32
  }
}

</mosaic_0001>

<bundles_post_ra>
// kernel: tpu_custom_call.1
= control target key start
LH: loop header
LB: loop body
LE: loop exit
PB: predicated region body
PF: predicated region fallthrough
CT: control target
= control target key end

     0   :  { %s1789_s0 = inlined_call_operand.vmem [shape: s32[3], index: 0, kind: input, shape index: {}]   ;;  %s1790_s3 = inlined_call_operand.vmem [shape: f32[256,256], index: 3, kind: input, shape index: {}]   ;;  %s1791_s4 = inlined_call_operand.vmem [shape: f32[256,2], index: 4, kind: input, shape index: {}]   ;;  %s1792_s5 = inlined_call_operand.vmem [shape: f32[2,256], index: 5, kind: input, shape index: {}]   ;;  %s1793_s6 = inlined_call_operand.vmem [shape: f32[256,1], index: 6, kind: input, shape index: {}]   ;;  %s1794_s7 = inlined_call_operand.vmem [shape: f32[1,256], index: 7, kind: input, shape index: {}]   ;;  %s1795_s8 = inlined_call_operand.hbm [shape: f32[1,1], index: 8, kind: output, shape index: {0}]   ;;  %s1796_s9 = inlined_call_operand.hbm [shape: f32[1,1], index: 9, kind: output, shape index: {1}]   ;;  %s1797_s1 = inlined_call_operand.vmem [shape: s32[3], index: 1, kind: input, shape index: {}]   ;;  %s1798_s2 = inlined_call_operand.vmem [shape: s32[3], index: 2, kind: input, shape index: {}]  }
   0x1   :  { %s15_s11 = sshll.u32 %s1789_s0, 4  ;;  %s19_s14 = sshll.u32 %s1797_s1, 4  ;;  %s16_s11 = int_to_ptr.vmem [resolvable:$true] %s15_s11  ;;  %s20_s14 = int_to_ptr.vmem [resolvable:$true] %s19_s14 }
   0x2   :  { %s1339_s15 = scalar_lea.vmem %s16_s11, 16  ;;  %p1344_p1 = scmp.lt.s32.totalorder %s16_s11, %s16_s11 }
   0x3   :  { %p1340_p0 = scmp.ne.s32.totalorder %s16_s11, %s1339_s15  ;;  %p1345_p2 = scmp.lt.s32.totalorder %s1339_s15, %s1339_s15 }
   0x5   :  { %p1346_p3 = por %p1345_p2, %p1344_p1 }
   0x7   :  { %p1347_p4 = pnand %p1346_p3, %p1340_p0 }
   0x9   :  { %1350 = shalt.err (!%p1347_p4)  }
   0xa   :  { %s1461_s16 = smov [#allocation3]   ;;  %s1351_s17 = scalar_lea.vmem %s20_s14, 16 }
   0xb   :  { %18 = dma.vmem_to_smem %s16_s11, 16, %s1461_s16, [#allocation2] }
   0xc   :  { %p1352_p5 = scmp.ne.s32.totalorder %s20_s14, %s1351_s17  ;;  %p1356_p6 = scmp.lt.s32.totalorder %s20_s14, %s20_s14 }
   0xd   :  { %p1357_p7 = scmp.lt.s32.totalorder %s1351_s17, %s1351_s17 }
   0xf   :  { %p1358_p8 = por %p1357_p7, %p1356_p6 }
  0x11   :  { %p1359_p9 = pnand %p1358_p8, %p1352_p5 }
  0x13   :  { %1362 = shalt.err (!%p1359_p9)  }
  0x14   :  { %s1462_s0 = smov [#allocation4]   ;;  %s23_s19 = sshll.u32 %s1798_s2, 4  ;;  %s24_s19 = int_to_ptr.vmem [resolvable:$true] %s23_s19 }
  0x15   :  { %22 = dma.vmem_to_smem %s20_s14, 16, %s1462_s0, [#allocation2] }
  0x16   :  { %s1363_s20 = scalar_lea.vmem %s24_s19, 16  ;;  %p1368_p11 = scmp.lt.s32.totalorder %s24_s19, %s24_s19 }
  0x17   :  { %p1364_p10 = scmp.ne.s32.totalorder %s24_s19, %s1363_s20  ;;  %p1369_p12 = scmp.lt.s32.totalorder %s1363_s20, %s1363_s20 }
  0x19   :  { %p1370_p13 = por %p1369_p12, %p1368_p11 }
  0x1b   :  { %p1371_p0 = pnand %p1370_p13, %p1364_p10 }
  0x1d   :  { %1374 = shalt.err (!%p1371_p0)  }
  0x1e   :  { %s1463_s21 = smov [#allocation5]  }
  0x1f   :  { %26 = dma.vmem_to_smem %s24_s19, 16, %s1463_s21, [#allocation2] }
  0x20   :  { %1439 = dma.done.wait [#allocation2], 48 }
  0x21   :  { %1440 = vsyncadd [#allocation2], 4294967248 }
  0x22   :  { %28 = sfence }
  0x23   :  { %29 = vsyncpa [#allocation8], 0 }
  0x24   :  { %30 = vsyncpa [#allocation10], 0  ;;  %s1527_s22 = smov 0   ;;  %s1529_s23 = smov 0  }
  0x25   :  { %s1531_s2 = smov 0  }
  0x26 LB: > { %s1543_s24 = sadd.s32 4294967295, %s1459_s2   ;;  %s1546_s25 = sadd.s32 1, %s1459_s2   ;;  %s1459_s2 = sphi %s1531_s2, %s1801_s2   ;;  %s1455_s23 = sphi %s1529_s23, %s1800_s23   ;;  %s1451_s22 = sphi %s1527_s22, %s1799_s22  }
  0x27   : > { %s40_s26 = sld [smem:[#allocation3 + %s1459_s2]]  ;;  %p56_p1 = scmp.ne.s32.totalorder %s1455_s23, %s1451_s22 }
  0x28   : > { %s41_s27 = sld [smem:[#allocation4 + %s1459_s2]]  ;;  %p57_p2 = scmp.eq.s32.totalorder %s1459_s2, 0 }
  0x29   : > { %s42_s28 = sld [smem:[#allocation3 + %s1546_s25]]  ;;  %s49_s12 = sadd.s32 1, %s1455_s23 }
  0x2a   : > { %s43_s29 = sld [smem:[#allocation4 + %s1546_s25]]  ;;  %p58_p3 = por %p57_p2, %p56_p1 }
  0x2b   : > { %p1143_p5 = scmp.ge.s32.totalorder %s1459_s2, 3 }
  0x2e   : > { %236 = sbr.rel (%p1143_p5) target bundleno = 72 (0x48), region = 16 }
  0x2f   : > { %s44_s30 = ssub.s32 %s40_s26, %s42_s28 }
  0x30   : > { %s45_s10 = ssub.s32 %s41_s27, %s43_s29 }
  0x31   : > { %s46_s11 = sor.u32 %s45_s10, %s44_s30 }
  0x32   : > { %p47_p4 = scmp.eq.s32.totalorder %s46_s11, 0 }
  0x34   : > { %s1557_s13 = scalar_select %p47_p4, %s1455_s23, %s49_s12  }
  0x35   : > { %239 = sbr.rel (!%p58_p3) target bundleno = 72 (0x48), region = 20  ;;  %s244_s14 = sld [smem:[#allocation3 + %s1459_s2]] (%p58_p3) }
  0x36   : > { %s245_s15 = sld [smem:[#allocation4 + %s1459_s2]] (%p58_p3)  ;;  %s241_s16 = sand.u32 (%p58_p3), 1, %s1455_s23  }
  0x37   : > { %s1144_s17 = sshll.u32 (%p58_p3), %s241_s16, 7 }
  0x38   : > { %s243_s26 = scalar_lea.vmem (%p58_p3), [#allocation6], %s1144_s17 }
  0x3b   : > { %s1180_s0 = sshll.u32 (%p58_p3), %s244_s14, 5 }
  0x3c   : > { %s248_s1 = sadd.s32 %s1180_s0, %s245_s15 }
  0x3d   : > { %s1147_s18 = sshll.u32 %s248_s1, 3 }
  0x3e   : > { %s1566_s21 = scalar_lea.vmem %s1790_s3, %s1147_s18 }
  0x3f   : > { %v308_v0 = vld [vmem:[%s1566_s21] sm:$0xff]  ;;  %v310_v1 = vld [vmem:[%s1566_s21 + $0x10] sm:$0xff] }
  0x40   : > { %v312_v2 = vld [vmem:[%s1566_s21 + $0x20] sm:$0xff]  ;;  %309 = vst [vmem:[%s243_s26] sm:$0xff] %v308_v0  ;;  %311 = vst [vmem:[%s243_s26 + $0x8] sm:$0xff] %v310_v1  ;;  %v314_v3 = vld [vmem:[%s1566_s21 + $0x30] sm:$0xff] }
  0x41   : > { %313 = vst [vmem:[%s243_s26 + $0x10] sm:$0xff] %v312_v2  ;;  %v316_v4 = vld [vmem:[%s1566_s21 + $0x40] sm:$0xff]  ;;  %v318_v5 = vld [vmem:[%s1566_s21 + $0x50] sm:$0xff]  ;;  %315 = vst [vmem:[%s243_s26 + $0x18] sm:$0xff] %v314_v3 }
  0x42   : > { %317 = vst [vmem:[%s243_s26 + $0x20] sm:$0xff] %v316_v4  ;;  %319 = vst [vmem:[%s243_s26 + $0x28] sm:$0xff] %v318_v5  ;;  %v320_v6 = vld [vmem:[%s1566_s21 + $0x60] sm:$0xff]  ;;  %v322_v7 = vld [vmem:[%s1566_s21 + $0x70] sm:$0xff] }
  0x43   : > { %v324_v8 = vld [vmem:[%s1566_s21 + $0x80] sm:$0xff]  ;;  %321 = vst [vmem:[%s243_s26 + $0x30] sm:$0xff] %v320_v6  ;;  %323 = vst [vmem:[%s243_s26 + $0x38] sm:$0xff] %v322_v7  ;;  %v326_v9 = vld [vmem:[%s1566_s21 + $0x90] sm:$0xff] }
  0x44   : > { %325 = vst [vmem:[%s243_s26 + $0x40] sm:$0xff] %v324_v8  ;;  %v328_v10 = vld [vmem:[%s1566_s21 + $0xa0] sm:$0xff]  ;;  %v330_v11 = vld [vmem:[%s1566_s21 + $0xb0] sm:$0xff]  ;;  %327 = vst [vmem:[%s243_s26 + $0x48] sm:$0xff] %v326_v9 }
  0x45   : > { %329 = vst [vmem:[%s243_s26 + $0x50] sm:$0xff] %v328_v10  ;;  %331 = vst [vmem:[%s243_s26 + $0x58] sm:$0xff] %v330_v11  ;;  %v332_v12 = vld [vmem:[%s1566_s21 + $0xc0] sm:$0xff]  ;;  %v334_v13 = vld [vmem:[%s1566_s21 + $0xd0] sm:$0xff] }
  0x46   : > { %v336_v14 = vld [vmem:[%s1566_s21 + $0xe0] sm:$0xff]  ;;  %333 = vst [vmem:[%s243_s26 + $0x60] sm:$0xff] %v332_v12  ;;  %335 = vst [vmem:[%s243_s26 + $0x68] sm:$0xff] %v334_v13  ;;  %v338_v15 = vld [vmem:[%s1566_s21 + $0xf0] sm:$0xff] }
  0x47   : > { %337 = vst [vmem:[%s243_s26 + $0x70] sm:$0xff] %v336_v14  ;;  %339 = vst [vmem:[%s243_s26 + $0x78] sm:$0xff] %v338_v15 }
  0x48 PF: > { %p1148_p6 = scmp.ge.s32.totalorder %s1459_s2, 1  ;;  %p383_p7 = scmp.lt.s32.totalorder %s1459_s2, 4 }
  0x4a   : > { %p384_p8 = pnand %p1148_p6, %p383_p7 }
  0x4b   : > { %s390_s27 = sand.u32 (!%p384_p8), 1, %s1451_s22   ;;  %s438_s28 = sld [smem:[#allocation3 + %s1543_s24]] (!%p384_p8) }
  0x4c   : > { %387 = sbr.rel (%p384_p8) target bundleno = 612 (0x264), region = 74  ;;  %s1149_s29 = sshll.u32 (!%p384_p8), %s390_s27, 7 }
  0x4d   : > { %s446_s30 = sld [smem:[#allocation4 + %s1543_s24]] (!%p384_p8)  ;;  %p1155_p13 = scmp.ne.s32.totalorder (!%p384_p8), %s1543_s24, 0 }
  0x4e   : > { %s452_s10 = sld [smem:[#allocation3 + %s1543_s24]] (!%p384_p8) }
  0x4f   : > { %s460_s11 = sld [smem:[#allocation4 + %s1543_s24]] (!%p384_p8) }
  0x51   : > { %s1150_s12 = sshll.u32 (!%p384_p8), %s438_s28, 4 }
  0x52   : > { %p440_p9 = scmp.lt.s32.totalorder (!%p384_p8), %s1150_s12, 31 }
  0x53   : > { %p447_p10 = scmp.lt.s32.totalorder %s446_s30, 1  ;;  %vm469_vm0 = vcmask (!%p1155_p13), 0   ;;  %v1464_v16 = vmov (!%p1155_p13), 0.0  }
  0x54   : > { %s1153_s14 = sshll.u32 %s452_s10, 4  ;;  %s1803_s12 = smov (!%p440_p9, %s1150_s12), 31  ;;  %470 = vst.msk [vmem:[#allocation7] sm:$0x1] (!%p1155_p13), %vm469_vm0, %v1464_v16  ;;  %471 = vst.msk [vmem:[#allocation9] sm:$0x1] (!%p1155_p13), %vm469_vm0, %v1464_v16 }
  0x55   : > { %s1805_s30 = smov (!%p447_p10, %s446_s30), 1  ;;  %s1151_s2 = sshll.u32 %s1803_s12, 3 }
  0x56   : > { %p454_p11 = scmp.lt.s32.totalorder %s1153_s14, 31  ;;  %s1594_s17 = scalar_lea.vmem %s1791_s4, %s1151_s2 }
  0x57   : > { %s1152_s0 = sshll.u32 %s1805_s30, 1  ;;  %p461_p12 = scmp.lt.s32.totalorder %s460_s11, 1 }
  0x58   : > { %s450_s18 = scalar_lea.vmem %s1792_s5, %s1152_s0  ;;  %s1807_s14 = smov (!%p454_p11, %s1153_s14), 31 }
  0x59   : > { %s1809_s11 = smov (!%p461_p12, %s460_s11), 1  ;;  %s1154_s19 = sshll.u32 %s1807_s14, 3 }
  0x5a   : > { %s1604_s26 = scalar_lea.vmem %s1793_s6, %s1154_s19  ;;  %s463_s10 = scalar_lea.vmem %s1794_s7, %s1809_s11 }
  0x5b   : > { %s1610_s30 = scalar_lea.vmem [#allocation6], %s1149_s29  ;;  %468 = sbr.rel (%p1155_p13) target bundleno = 98 (0x62), region = 82 }
  0x62 PF: > { %v488_v17 = vld [vmem:[%s450_s18] sm:$0x3]  ;;  %vm538_vm1 = vcmask 1041408   ;;  %vm489_vm2 = vcmask 15360   ;;  %v473_v20 = vld [vmem:[%s1594_s17 + $0x8] sm:$0xff]  ;;  %v474_v22 = vld [vmem:[%s1594_s17 + $0x10] sm:$0xff] }
  0x63   : > { %v472_v18 = vld [vmem:[%s1594_s17] sm:$0xff]  ;;  %1198 = vmatprep.subr.msk.mxu0 %vm538_vm1, %v488_v17  ;;  %1224 = vmatprep.subr.msk.mxu1 %vm538_vm1, %v488_v17  ;;  %v481_v21 = vld [vmem:[%s1594_s17 + $0x48] sm:$0xff]  ;;  %v482_v23 = vld [vmem:[%s1594_s17 + $0x50] sm:$0xff]  ;;  %v1465_v29 = vmov 0   ;;  %s918_s11 = sld [smem:[#allocation3 + %s1543_s24]]  ;;  %s1466_s18 = smov [#allocation7]  }
  0x64   : > { %v480_v19 = vld [vmem:[%s1594_s17 + $0x40] sm:$0xff]  ;;  %1199 = vmatpush3.msk.msra.mxu0 %vm538_vm1, %v488_v17  ;;  %1225 = vmatpush3.msk.msra.mxu1 %vm538_vm1, %v488_v17  ;;  %v475_v24 = vld [vmem:[%s1594_s17 + $0x18] sm:$0xff]  ;;  %v689_v31 = vld [vmem:[%s1604_s26 + $0x10] sm:$0xff]  ;;  %s919_s14 = sld [smem:[#allocation4 + %s1543_s24]]  ;;  %s1027_s19 = sshll.u32 %s1466_s18, 4  ;;  %vm1015_vm3 = vcmask 0   ;;  %s1028_s19 = int_to_ptr.vmem [resolvable:$true] %s1027_s19 }
  0x65   : > { %1200 = vmatprep.mubr.msk.f32.mxu0 %vm489_vm2, %v472_v18  ;;  %1212 = vmatprep.mubr.msk.f32.mxu1 %vm489_vm2, %v480_v19  ;;  %v483_v25 = vld [vmem:[%s1594_s17 + $0x58] sm:$0xff]  ;;  %v687_v26 = vld [vmem:[%s1604_s26] sm:$0xff]  ;;  %v705_v32 = vadd.f32 1.0, %v689_v31  ;;  %v688_v33 = vld [vmem:[%s1604_s26 + $0x8] sm:$0xff]  ;;  %s923_s15 = sld [smem:[#allocation5 + %s1543_s24]]  ;;  %s1467_s20 = smov [#allocation9]  }
  0x66   : > { %1201 = vmatmul.mubr.msk.f32.vlgmr.msra.gmra.mrb[0].mxu0 %vm489_vm2, %v473_v20  ;;  %1213 = vmatmul.mubr.msk.f32.vlgmr.msra.gmra.mrb[0].mxu1 %vm489_vm2, %v481_v21  ;;  %v476_v27 = vld [vmem:[%s1594_s17 + $0x20] sm:$0xff]  ;;  %v703_v30 = vadd.f32 1.0, %v687_v26  ;;  %v690_v34 = vld [vmem:[%s1604_s26 + $0x18] sm:$0xff]  ;;  %v477_v35 = vld [vmem:[%s1594_s17 + $0x28] sm:$0xff]  ;;  %v704_v39 = vadd.f32 1.0, %v688_v33  ;;  %s1038_s21 = sshll.u32 %s1467_s20, 4  ;;  %p1382_p5 = scmp.lt.s32.totalorder %s1028_s19, %s1028_s19  ;;  %s1725_s21 = int_to_ptr.vmem [resolvable:$true] %s1038_s21 }
  0x67   : > { %1203 = vmatprep.mubr.msk.f32.mxu0 %vm489_vm2, %v474_v22  ;;  %1215 = vmatprep.mubr.msk.f32.mxu1 %vm489_vm2, %v482_v23  ;;  %v484_v28 = vld [vmem:[%s1594_s17 + $0x60] sm:$0xff]  ;;  %v485_v36 = vld [vmem:[%s1594_s17 + $0x68] sm:$0xff]  ;;  %v478_v37 = vld [vmem:[%s1594_s17 + $0x30] sm:$0xff]  ;;  %v706_v40 = vadd.f32 1.0, %v690_v34  ;;  %p1238_p1 = scmp.eq.s32.totalorder %s1543_s24, 2  ;;  %s1375_s27 = scalar_lea.vmem %s1028_s19, 16 }
  0x68   : > { %1273 = vset.pattern.permute.xlu0 %v1465_v29  ;;  %1274 = vset.pattern.permute.xlu1 %v1465_v29  ;;  %v486_v38 = vld [vmem:[%s1594_s17 + $0x70] sm:$0xff]  ;;  %v691_v41 = vld [vmem:[%s1604_s26 + $0x20] sm:$0xff]  ;;  %v692_v42 = vld [vmem:[%s1604_s26 + $0x28] sm:$0xff]  ;;  %p1376_p2 = scmp.ne.s32.totalorder %s1028_s19, %s1375_s27  ;;  %s1381_s28 = scalar_lea.vmem %s1028_s19, 32 }
  0x69   : > { %722 = vperm.xlu0 %1273, %v703_v30   ;;  %732 = vperm.xlu1 %1274, %v705_v32   ;;  %v479_v43 = vld [vmem:[%s1594_s17 + $0x38] sm:$0xff]  ;;  %v707_v45 = vadd.f32 1.0, %v691_v41  ;;  %v708_v46 = vadd.f32 1.0, %v692_v42  ;;  %v693_v47 = vld [vmem:[%s1604_s26 + $0x30] sm:$0xff]  ;;  %v695_v51 = vld [vmem:[%s1604_s26 + $0x40] sm:$0xff]  ;;  %p1383_p6 = scmp.lt.s32.totalorder %s1381_s28, %s1375_s27 }
  0x6a   : > { %1204 = vmatmul.mubr.msk.f32.gmra.mrb[2].mxu0 %vm489_vm2, %v475_v24  ;;  %1216 = vmatmul.mubr.msk.f32.gmra.mrb[2].mxu1 %vm489_vm2, %v483_v25  ;;  %v487_v44 = vld [vmem:[%s1594_s17 + $0x78] sm:$0xff]  ;;  %v709_v49 = vadd.f32 1.0, %v693_v47  ;;  %v696_v52 = vld [vmem:[%s1604_s26 + $0x48] sm:$0xff]  ;;  %v711_v53 = vadd.f32 1.0, %v695_v51  ;;  %v697_v55 = vld [vmem:[%s1604_s26 + $0x50] sm:$0xff]  ;;  %p920_p0 = scmp.eq.s32.totalorder %s918_s11, %s919_s14  ;;  %p1377_p3 = pnand %p1376_p2, %p1238_p1 }
  0x6b   : > { %1206 = vmatprep.mubr.msk.f32.mxu0 %vm489_vm2, %v476_v27  ;;  %1218 = vmatprep.mubr.msk.f32.mxu1 %vm489_vm2, %v484_v28  ;;  %v694_v48 = vld [vmem:[%s1604_s26 + $0x38] sm:$0xff]  ;;  %v712_v54 = vadd.f32 1.0, %v696_v52  ;;  %v713_v57 = vadd.f32 1.0, %v697_v55  ;;  %v699_v59 = vld [vmem:[%s1604_s26 + $0x60] sm:$0xff]  ;;  %v700_v60 = vld [vmem:[%s1604_s26 + $0x68] sm:$0xff]  ;;  %s924_s0 = scvt.s32.f32 %s923_s15  ;;  %p1384_p7 = por %p1383_p6, %p1382_p5 }
  0x6c   : > { %v710_v50 = vadd.f32 1.0, %v694_v48  ;;  %v698_v56 = vld [vmem:[%s1604_s26 + $0x58] sm:$0xff]  ;;  %v715_v61 = vadd.f32 1.0, %v699_v59  ;;  %v716_v62 = vadd.f32 1.0, %v700_v60  ;;  %v701_v63 = vld [vmem:[%s1604_s26 + $0x70] sm:$0xff]  ;;  %v956_v52 = vld [vmem:[%s1610_s30] sm:$0xff]  ;;  %p1378_p4 = pneg %p1377_p3 }
  0x6d   : > { %727 = vperm.xlu0 %1273, %v704_v39   ;;  %737 = vperm.xlu1 %1274, %v706_v40   ;;  %v714_v58 = vadd.f32 1.0, %v698_v56  ;;  %v702_v0 = vld [vmem:[%s1604_s26 + $0x78] sm:$0xff]  ;;  %v717_v1 = vadd.f32 1.0, %v701_v63  ;;  %v1666_v5 = vld [vmem:[%s463_s10] ss:$0 sm:$0xff] }
  0x6e   : > { %1207 = vmatmul.mubr.msk.f32.gmra.mrb[4].mxu0 %vm489_vm2, %v477_v35  ;;  %1219 = vmatmul.mubr.msk.f32.gmra.mrb[4].mxu1 %vm489_vm2, %v485_v36  ;;  %v718_v2 = vadd.f32 1.0, %v702_v0  ;;  %s921_s2 = scalar_select %p920_p0, 1, 0 }
  0x6f   : > { %1209 = vmatprep.mubr.msk.f32.mxu0 %vm489_vm2, %v478_v37  ;;  %1221 = vmatprep.mubr.msk.f32.mxu1 %vm489_vm2, %v486_v38  ;;  %p1385_p8 = pnand %p1384_p7, %p1378_p4 }
  0x70   : > { %s922_s16 = scvt.s32.f32 %s921_s2 }
  0x71   : > { %742 = vperm.xlu0 %1273, %v707_v45   ;;  %747 = vperm.xlu1 %1274, %v708_v46   ;;  %v957_v46 = vld [vmem:[%s1610_s30 + $0x8] sm:$0xff] }
  0x72   : > { %1210 = vmatmul.mubr.msk.f32.gmra.mrb[6].mxu0 %vm489_vm2, %v479_v43  ;;  %1222 = vmatmul.mubr.msk.f32.gmra.mrb[6].mxu1 %vm489_vm2, %v487_v44  ;;  %s925_s17 = smul.f32 0.5, %s922_s16 }
  0x74   : > { %s926_s22 = ssub.f32 1.0, %s925_s17 }
  0x75   : > { %752 = vperm.xlu0 %1273, %v709_v49   ;;  %757 = vperm.xlu1 %1274, %v710_v50  }
  0x79   : > { %762 = vperm.xlu0 %1273, %v711_v53   ;;  %767 = vperm.xlu1 %1274, %v712_v54  }
  0x7d   : > { %772 = vperm.xlu0 %1273, %v713_v57   ;;  %777 = vperm.xlu1 %1274, %v714_v58  }
  0x81   : > { %782 = vperm.xlu0 %1273, %v715_v61   ;;  %787 = vperm.xlu1 %1274, %v716_v62  }
  0x85   : > { %792 = vperm.xlu0 %1273, %v717_v1   ;;  %797 = vperm.xlu1 %1274, %v718_v2  }
  0xe8   : > { %v723_v3 = vpop.permute.xlu0 %722  ;;  %v733_v4 = vpop.permute.xlu1 %732 }
  0xe9   : > { %v806_v15 = vadd.f32 %v1666_v5, %v723_v3  ;;  %v808_v31 = vadd.f32 %v1666_v5, %v733_v4 }
  0xec   : > { %v728_v6 = vpop.permute.xlu0 %727  ;;  %v738_v8 = vpop.permute.xlu1 %737 }
  0xed   : > { %v807_v7 = vadd.f32 %v1666_v5, %v728_v6  ;;  %v809_v24 = vadd.f32 %v1666_v5, %v738_v8 }
  0xf0   : > { %v743_v16 = vpop.permute.xlu0 %742  ;;  %v748_v23 = vpop.permute.xlu1 %747 }
  0xf1   : > { %v811_v45 = vadd.f32 %v1666_v5, %v748_v23  ;;  %v810_v48 = vadd.f32 %v1666_v5, %v743_v16 }
  0xf4   : > { %v753_v32 = vpop.permute.xlu0 %752  ;;  %v758_v39 = vpop.permute.xlu1 %757 }
  0xf5   : > { %v813_v2 = vadd.f32 %v1666_v5, %v758_v39  ;;  %v812_v4 = vadd.f32 %v1666_v5, %v753_v32 }
  0xf8   : > { %v763_v49 = vpop.permute.xlu0 %762  ;;  %v768_v54 = vpop.permute.xlu1 %767 }
  0xf9   : > { %v814_v61 = vadd.f32 %v1666_v5, %v763_v49  ;;  %v961_v49 = vld [vmem:[%s1610_s30 + $0x28] sm:$0xff] }
  0xfc   : > { %v773_v62 = vpop.permute.xlu0 %772  ;;  %v778_v6 = vpop.permute.xlu1 %777 }
 0x139   : > { %v1202_v9 = vpop.f32.mrb[0].mxu0  ;;  %v1669_v10 = vpop.f32.mrb[0].mxu1 }
 0x13a   : > { %v823_v11 = vmul.f32 2.0, %v1202_v9  ;;  %v608_v12 = vpop.f32.mrb[1].mxu0  ;;  %v648_v13 = vpop.f32.mrb[1].mxu1  ;;  %v815_v9 = vadd.f32 %v1666_v5, %v768_v54 }
 0x13b   : > { %v822_v14 = vmul.f32 2.0, %v608_v12  ;;  %v830_v59 = vmul.f32 2.0, %v648_v13  ;;  %v958_v13 = vld [vmem:[%s1610_s30 + $0x10] sm:$0xff] }
 0x13c   : > { %v839_v17 = vsub.f32 %v807_v7, %v823_v11  ;;  %v831_v11 = vmul.f32 2.0, %v1669_v10 }
 0x13d   : > { %v1205_v18 = vpop.f32.mrb[2].mxu0  ;;  %v1672_v19 = vpop.f32.mrb[2].mxu1  ;;  %v838_v20 = vsub.f32 %v806_v15, %v822_v14  ;;  %v846_v7 = vsub.f32 %v814_v61, %v830_v59 }
 0x13e   : > { %v618_v21 = vpop.f32.mrb[3].mxu0  ;;  %v1674_v22 = vpop.f32.mrb[3].mxu1  ;;  %1275 = vlog2.f32 %v839_v17  ;;  %v825_v25 = vmul.f32 2.0, %v1205_v18  ;;  %v833_v10 = vmul.f32 2.0, %v1672_v19 }
 0x13f   : > { %1277 = vrcp.f32 %v839_v17  ;;  %v824_v28 = vmul.f32 2.0, %v618_v21  ;;  %v832_v21 = vmul.f32 2.0, %v1674_v22 }
 0x140   : > { %1279 = vrcp.f32 %v838_v20  ;;  %v841_v33 = vsub.f32 %v809_v24, %v825_v25  ;;  %v816_v24 = vadd.f32 %v1666_v5, %v773_v62  ;;  %v783_v25 = vpop.permute.xlu0 %782 }
 0x141   : > { %v1208_v26 = vpop.f32.mrb[4].mxu0  ;;  %v1677_v27 = vpop.f32.mrb[4].mxu1  ;;  %1281 = vlog2.f32 %v838_v20  ;;  %v840_v36 = vsub.f32 %v808_v31, %v824_v28  ;;  %v959_v20 = vld [vmem:[%s1610_s30 + $0x18] sm:$0xff]  ;;  %v817_v28 = vadd.f32 %v1666_v5, %v778_v6  ;;  %v818_v39 = vadd.f32 %v1666_v5, %v783_v25 }
 0x142   : > { %v628_v29 = vpop.f32.mrb[5].mxu0  ;;  %v1679_v30 = vpop.f32.mrb[5].mxu1  ;;  %1283 = vlog2.f32 %v841_v33  ;;  %v827_v41 = vmul.f32 2.0, %v1208_v26 }
 0x143   : > { %1285 = vrcp.f32 %v840_v36  ;;  %v826_v44 = vmul.f32 2.0, %v628_v29  ;;  %v847_v29 = vsub.f32 %v815_v9, %v831_v11  ;;  %v788_v31 = vpop.permute.xlu1 %787  ;;  %v834_v22 = vmul.f32 2.0, %v1679_v30 }
 0x144   : > { %1287 = vlog2.f32 %v840_v36  ;;  %v843_v53 = vsub.f32 %v811_v45, %v827_v41  ;;  %v848_v36 = vsub.f32 %v816_v24, %v832_v21  ;;  %v849_v19 = vsub.f32 %v817_v28, %v833_v10 }
 0x145   : > { %v1211_v34 = vpop.f32.mrb[6].mxu0  ;;  %v1682_v35 = vpop.f32.mrb[6].mxu1  ;;  %1289 = vrcp.f32 %v841_v33  ;;  %v842_v57 = vsub.f32 %v810_v48, %v826_v44  ;;  %v960_v44 = vld [vmem:[%s1610_s30 + $0x20] sm:$0xff] }
 0x146   : > { %v638_v37 = vpop.f32.mrb[7].mxu0  ;;  %v1684_v38 = vpop.f32.mrb[7].mxu1  ;;  %1291 = vlog2.f32 %v843_v53  ;;  %v829_v60 = vmul.f32 2.0, %v1211_v34 }
 0x147   : > { %1293 = vrcp.f32 %v842_v57  ;;  %v828_v0 = vmul.f32 2.0, %v638_v37 }
 0x148   : > { %v1276_v40 = vpop.eup %1275  ;;  %1295 = vlog2.f32 %v842_v57  ;;  %v845_v14 = vsub.f32 %v813_v2, %v829_v60 }
 0x149   : > { %v1278_v42 = vpop.eup %1277  ;;  %v889_v43 = vmul.f32 0.6931472, %v1276_v40  ;;  %1297 = vrcp.f32 %v843_v53  ;;  %v844_v18 = vsub.f32 %v812_v4, %v828_v0  ;;  %v798_v53 = vpop.permute.xlu1 %797 }
 0x14a   : > { %v1280_v47 = vpop.eup %1279  ;;  %1299 = vlog2.f32 %v846_v7  ;;  %v821_v61 = vadd.f32 %v1666_v5, %v798_v53 }
 0x14b   : > { %v1282_v50 = vpop.eup %1281  ;;  %v927_v51 = vadd.f32 %v1280_v47, %v1278_v42  ;;  %v973_v55 = vmul.f32 %v957_v46, %v889_v43  ;;  %1301 = vlog2.f32 %v845_v14  ;;  %v835_v42 = vmul.f32 2.0, %v1677_v27  ;;  %v793_v47 = vpop.permute.xlu0 %792 }
 0x14c   : > { %v887_v56 = vmul.f32 0.6931472, %v1282_v50  ;;  %v1284_v1 = vpop.eup %1283  ;;  %1303 = vrcp.f32 %v844_v18  ;;  %v819_v46 = vadd.f32 %v1666_v5, %v788_v31  ;;  %v850_v50 = vsub.f32 %v818_v39, %v834_v22  ;;  %v966_v31 = vld [vmem:[%s1610_s30 + $0x50] sm:$0xff]  ;;  %v967_v39 = vld [vmem:[%s1610_s30 + $0x58] sm:$0xff] }
 0x14d   : > { %v1286_v3 = vpop.eup %1285  ;;  %v893_v16 = vmul.f32 0.6931472, %v1284_v1  ;;  %1305 = vlog2.f32 %v844_v18  ;;  %v820_v27 = vadd.f32 %v1666_v5, %v793_v47 }
 0x14e   : > { %v972_v58 = vmul.f32 %v956_v52, %v887_v56  ;;  %v1288_v8 = vpop.eup %1287  ;;  %v928_v12 = vadd.f32 %v1286_v3, %v927_v51  ;;  %1307 = vrcp.f32 %v845_v14  ;;  %v836_v52 = vmul.f32 2.0, %v1684_v38  ;;  %v964_v14 = vld [vmem:[%s1610_s30 + $0x40] sm:$0xff] }
 0x14f   : > { %v1290_v15 = vpop.eup %1289  ;;  %v891_v17 = vmul.f32 0.6931472, %v1288_v8  ;;  %v975_v32 = vmul.f32 %v959_v20, %v893_v16  ;;  %1309 = vlog2.f32 %v847_v29  ;;  %v837_v56 = vmul.f32 2.0, %v1682_v35  ;;  %v962_v35 = vld [vmem:[%s1610_s30 + $0x30] sm:$0xff]  ;;  %v963_v8 = vld [vmem:[%s1610_s30 + $0x38] sm:$0xff] }
 0x150   : > { %v988_v63 = vadd.f32 %v973_v55, %v972_v58  ;;  %v929_v23 = vadd.f32 %v1290_v15, %v928_v12  ;;  %v1292_v34 = vpop.eup %1291  ;;  %1311 = vrcp.f32 %v846_v7  ;;  %v851_v55 = vsub.f32 %v819_v46, %v835_v42 }
 0x151   : > { %v974_v26 = vmul.f32 %v958_v13, %v891_v17  ;;  %v1294_v37 = vpop.eup %1293  ;;  %v897_v30 = vmul.f32 0.6931472, %v1292_v34  ;;  %1313 = vlog2.f32 %v848_v36  ;;  %v852_v38 = vsub.f32 %v820_v27, %v836_v52  ;;  %v969_v52 = vld [vmem:[%s1610_s30 + $0x68] sm:$0xff] }
 0x152   : > { %v1296_v41 = vpop.eup %1295  ;;  %v930_v43 = vadd.f32 %v1294_v37, %v929_v23  ;;  %1315 = vrcp.f32 %v847_v29  ;;  %v853_v1 = vsub.f32 %v821_v61, %v837_v56  ;;  %v965_v23 = vld [vmem:[%s1610_s30 + $0x48] sm:$0xff] }
 0x153   : > { %v989_v33 = vadd.f32 %v988_v63, %v974_v26  ;;  %v1298_v45 = vpop.eup %1297  ;;  %v895_v48 = vmul.f32 0.6931472, %v1296_v41  ;;  %1317 = vlog2.f32 %v849_v19  ;;  %v977_v58 = vmul.f32 %v961_v49, %v897_v30 }
 0x154   : > { %v931_v51 = vadd.f32 %v1298_v45, %v930_v43  ;;  %v1300_v57 = vpop.eup %1299  ;;  %1319 = vrcp.f32 %v848_v36  ;;  %v968_v45 = vld [vmem:[%s1610_s30 + $0x60] sm:$0xff] }
 0x155   : > { %v990_v40 = vadd.f32 %v989_v33, %v975_v32  ;;  %v976_v54 = vmul.f32 %v960_v44, %v895_v48  ;;  %v1302_v60 = vpop.eup %1301  ;;  %1321 = vlog2.f32 %v850_v50  ;;  %v903_v11 = vmul.f32 0.6931472, %v1300_v57  ;;  %v970_v57 = vld [vmem:[%s1610_s30 + $0x70] sm:$0xff] }
 0x156   : > { %v1304_v62 = vpop.eup %1303  ;;  %1323 = vrcp.f32 %v849_v19  ;;  %v901_v4 = vmul.f32 0.6931472, %v1302_v60 }
 0x157   : > { %v991_v59 = vadd.f32 %v990_v40, %v976_v54  ;;  %v1306_v0 = vpop.eup %1305  ;;  %1325 = vlog2.f32 %v851_v55  ;;  %v932_v2 = vadd.f32 %v1304_v62, %v931_v51  ;;  %v980_v26 = vmul.f32 %v964_v14, %v903_v11  ;;  %v971_v62 = vld [vmem:[%s1610_s30 + $0x78] sm:$0xff] }
 0x158   : > { %v1308_v3 = vpop.eup %1307  ;;  %1327 = vrcp.f32 %v850_v50  ;;  %v899_v6 = vmul.f32 0.6931472, %v1306_v0  ;;  %v979_v18 = vmul.f32 %v963_v8, %v901_v4 }
 0x159   : > { %v992_v63 = vadd.f32 %v991_v59, %v977_v58  ;;  %v1310_v7 = vpop.eup %1309  ;;  %v933_v9 = vadd.f32 %v1308_v3, %v932_v2  ;;  %1329 = vlog2.f32 %v852_v38 }
 0x15a   : > { %v1312_v5 = vpop.eup %1311  ;;  %1331 = vrcp.f32 %v851_v55  ;;  %v978_v12 = vmul.f32 %v962_v35, %v899_v6  ;;  %v905_v17 = vmul.f32 0.6931472, %v1310_v7 }
 0x15b   : > { %v1314_v13 = vpop.eup %1313  ;;  %1333 = vlog2.f32 %v853_v1  ;;  %v934_v15 = vadd.f32 %v1312_v5, %v933_v9 }
 0x15c   : > { %v1316_v16 = vpop.eup %1315  ;;  %v993_v20 = vadd.f32 %v992_v63, %v978_v12  ;;  %1335 = vrcp.f32 %v852_v38  ;;  %v907_v28 = vmul.f32 0.6931472, %v1314_v13  ;;  %v981_v34 = vmul.f32 %v965_v23, %v905_v17 }
 0x15d   : > { %v1318_v21 = vpop.eup %1317  ;;  %v935_v24 = vadd.f32 %v1316_v16, %v934_v15  ;;  %1337 = vrcp.f32 %v853_v1 }
 0x15e   : > { %v1320_v25 = vpop.eup %1319  ;;  %v994_v29 = vadd.f32 %v993_v20, %v979_v18  ;;  %v909_v36 = vmul.f32 0.6931472, %v1318_v21  ;;  %v982_v19 = vmul.f32 %v966_v31, %v907_v28  ;;  %v952_v18 = vstv %s924_s0 }
 0x15f   : > { %v1322_v10 = vpop.eup %1321  ;;  %v936_v32 = vadd.f32 %v1320_v25, %v935_v24  ;;  %v954_v21 = vstv %s926_s22  ;;  %v1013_v24 = vld [vmem:[#allocation7] sm:$0x1] }
 0x160   : > { %v1324_v33 = vpop.eup %1323  ;;  %v995_v22 = vadd.f32 %v994_v29, %v980_v26  ;;  %v911_v42 = vmul.f32 0.6931472, %v1322_v10  ;;  %v983_v30 = vmul.f32 %v967_v39, %v909_v36  ;;  %v1017_v26 = vld [vmem:[#allocation9] sm:$0x1] }
 0x161   : > { %v1326_v37 = vpop.eup %1325  ;;  %v937_v40 = vadd.f32 %v1324_v33, %v936_v32 }
 0x162   : > { %v1328_v41 = vpop.eup %1327  ;;  %v996_v43 = vadd.f32 %v995_v22, %v981_v34  ;;  %v913_v48 = vmul.f32 0.6931472, %v1326_v37  ;;  %v984_v54 = vmul.f32 %v968_v45, %v911_v42 }
 0x163   : > { %v1330_v44 = vpop.eup %1329  ;;  %v938_v46 = vadd.f32 %v1328_v41, %v937_v40 }
 0x164   : > { %v1332_v47 = vpop.eup %1331  ;;  %v997_v49 = vadd.f32 %v996_v43, %v982_v19  ;;  %v915_v27 = vmul.f32 0.6931472, %v1330_v44  ;;  %v985_v60 = vmul.f32 %v969_v52, %v913_v48 }
 0x165   : > { %v1334_v50 = vpop.eup %1333  ;;  %v939_v51 = vadd.f32 %v1332_v47, %v938_v46 }
 0x166   : > { %v1336_v53 = vpop.eup %1335  ;;  %v998_v55 = vadd.f32 %v997_v49, %v983_v30  ;;  %v917_v59 = vmul.f32 0.6931472, %v1334_v50  ;;  %v986_v63 = vmul.f32 %v970_v57, %v915_v27 }
 0x167   : > { %v940_v56 = vadd.f32 %v1336_v53, %v939_v51  ;;  %v1338_v58 = vpop.eup %1337 }
 0x168   : > { %v999_v61 = vadd.f32 %v998_v55, %v984_v54  ;;  %v987_v1 = vmul.f32 %v971_v62, %v917_v59 }
 0x169   : > { %v941_v38 = vadd.f32 %v1338_v58, %v940_v56 }
 0x16a   : > { %v1000_v0 = vadd.f32 %v999_v61, %v985_v60 }
 0x16b   : > { %942 = vadd.xlane.f32.xlu0 %v941_v38 }
 0x16c   : > { %v1001_v2 = vadd.f32 %v1000_v0, %v986_v63 }
 0x16e   : > { %v1002_v35 = vadd.f32 %v1001_v2, %v987_v1 }
 0x170   : > { %1003 = vadd.xlane.f32.xlu1 %v1002_v35 }
 0x1f8   : > { %v943_v3 = vpop.xlane.xlu0 %942 }
 0x1f9   : > { %v944_v4 = vrot.slane %v943_v3, 4 }
 0x1fb   : > { %v945_v6 = vadd.f32 %v944_v4, %v943_v3 }
 0x1fd   : > { %v946_v7 = vrot.slane %v945_v6, 2  ;;  %v1004_v8 = vpop.xlane.xlu1 %1003 }
 0x1fe   : > { %v1005_v9 = vrot.slane %v1004_v8, 4 }
 0x1ff   : > { %v947_v5 = vadd.f32 %v946_v7, %v945_v6 }
 0x200   : > { %v1006_v11 = vadd.f32 %v1005_v9, %v1004_v8 }
 0x201   : > { %v948_v12 = vrot.slane %v947_v5, 1 }
 0x202   : > { %v1007_v13 = vrot.slane %v1006_v11, 2 }
 0x203   : > { %v949_v14 = vadd.f32 %v948_v12, %v947_v5 }
 0x204   : > { %v1008_v15 = vadd.f32 %v1007_v13, %v1006_v11 }
 0x205   : > { %1226 = vpush %v949_v14 }
 0x206   : > { %v1009_v16 = vrot.slane %v1008_v15, 1 }
 0x208   : > { %v1010_v17 = vadd.f32 %v1009_v16, %v1008_v15 }
 0x20a   : > { %1228 = vpush %v1010_v17 }
 0x236   : > { %s1227_s1 = spop %1226 }
 0x237   : > { %v951_v20 = vstv %s1227_s1 }
 0x238   : > { %v953_v23 = vsub.f32 %v951_v20, %v952_v18 }
 0x23a   : > { %v955_v25 = vmul.f32 %v954_v21, %v953_v23 }
 0x23b   : > { %s1229_s26 = spop %1228 }
 0x23c   : > { %v1012_v28 = vstv %s1229_s26  ;;  %v1014_v29 = vadd.f32 %v1013_v24, %v955_v25 }
 0x23d   : > { %v1018_v10 = vadd.f32 %v1017_v26, %v1012_v28 }
 0x23e   : > { %1016 = vst.msk [vmem:[#allocation7] sm:$0x1] %vm1015_vm3, %v1014_v29 }
 0x23f   : > { %1388 = shalt.err (!%p1385_p8)
}
 0x240   : > { %s1389_s29 = scalar_lea.hbm %s1795_s8, 16 }
 0x241   : > { %p1390_p9 = scmp.ne.s32.totalorder %s1795_s8, %s1389_s29  ;;  %p1395_p12 = scmp.lt.u32.totalorder %s1389_s29, %s1795_s8 }
 0x243   : > { %p1391_p10 = pnand %p1390_p9, %p1238_p1 }
 0x245   : > { %p1392_p11 = pneg %p1391_p10 }
 0x247   : > { %p1397_p13 = pnand %p1395_p12, %p1392_p11 }
 0x249   : > { %1400 = shalt.err (!%p1397_p13)
}
 0x24a   : > { %1231 = dma.vmem_to_hbm [thread:$0]  (%p1238_p1), %s1028_s19, 16, %s1795_s8, [#allocation8]   ;;  %1019 = vst.msk [vmem:[#allocation9] sm:$0x1] %vm1015_vm3, %v1018_v10 }
 0x24b   : > { %s1401_s17 = scalar_lea.vmem %s1725_s21, 16  ;;  %s1407_s0 = scalar_lea.vmem %s1725_s21, 32 }
 0x24c   : > { %p1402_p0 = scmp.ne.s32.totalorder %s1725_s21, %s1401_s17  ;;  %p1408_p4 = scmp.lt.s32.totalorder %s1725_s21, %s1725_s21 }
 0x24d   : > { %p1409_p5 = scmp.lt.s32.totalorder %s1407_s0, %s1401_s17 }
 0x24e   : > { %p1403_p2 = pnand %p1402_p0, %p1238_p1 }
 0x24f   : > { %p1410_p6 = por %p1409_p5, %p1408_p4 }
 0x250   : > { %p1404_p3 = pneg %p1403_p2 }
 0x252   : > { %p1411_p7 = pnand %p1410_p6, %p1404_p3 }
 0x254   : > { %1414 = shalt.err (!%p1411_p7)
}
 0x255   : > { %s1415_s18 = scalar_lea.hbm %s1796_s9, 16 }
 0x256   : > { %p1416_p8 = scmp.ne.s32.totalorder %s1796_s9, %s1415_s18  ;;  %p1421_p11 = scmp.lt.u32.totalorder %s1415_s18, %s1796_s9 }
 0x258   : > { %p1417_p9 = pnand %p1416_p8, %p1238_p1 }
 0x25a   : > { %p1418_p10 = pneg %p1417_p9 }
 0x25c   : > { %p1423_p12 = pnand %p1421_p11, %p1418_p10 }
 0x25e   : > { %1426 = shalt.err (!%p1423_p12)
}
 0x25f   : > { %1233 = dma.vmem_to_hbm [thread:$0]  (%p1238_p1), %s1725_s21, 16, %s1796_s9, [#allocation10]  }
 0x260   : > { %1442 = dma.done.wait (%p1238_p1), [#allocation8], 16  }
 0x261   : > { %1444 = vsyncadd (%p1238_p1), [#allocation8], 4294967280 }
 0x262   : > { %1446 = dma.done.wait (%p1238_p1), [#allocation10], 16  }
 0x263   : > { %1448 = vsyncadd (%p1238_p1), [#allocation10], 4294967280 }
 0x264 PF: > { %p33_p13 = scmp.ge.s32.totalorder %s1546_s25, 5   ;;  %s1799_s22 = smov %s1455_s23 }
 0x265   : > { %s1800_s23 = smov %s1557_s13  ;;  %s1801_s2 = smov %s1546_s25 }
 0x266   :  { %35 = sbr.rel (!%p33_p13) target bundleno = 38 (0x26), region = 134 }
 0x26d   :  { %1055 = vsyncpa [#allocation8], 1 }
 0x26e   :  { %1057 = vsyncpa [#allocation8 + $0x1], 1 }
 0x26f   :  { %1058 = vsyncpa [#allocation10], 1 }

</bundles_post_ra>
